<compile_context>
chip_gen: v6e
topology: v6e:2x2x1
jax: 0.10.0
libtpu: 0.0.40
codegen_flags: <defaults>
</compile_context>

<pallas_src>
import functools

import jax
import jax.numpy as jnp
from jax.experimental import pallas as pl
from jax.experimental.pallas import tpu as pltpu


def channel_attention_kernel(x_ref, w1t_ref, w2t_ref, o_ref, acc_ref, *, inv_hw):
    # x_ref:   (Nb, C, HW_tile)  batch tile of channels x flattened-spatial tile
    # w1t_ref: (C, Cr)           fc1 weight transposed (Conv2d (Cr,C,1,1) -> (C,Cr))
    # w2t_ref: (Cr, C)           fc2 weight transposed
    # o_ref:   (Nb, C)           per-channel attention (lane-dense)
    # acc_ref: (Nb, C) f32       running spatial sum (resident across hw grid axis)
    k = pl.program_id(1)

    @pl.when(k == 0)
    def _():
        acc_ref[...] = jnp.zeros_like(acc_ref)

    # Accumulate the spatial sum in f32 (safe even for bf16 inputs).
    x = x_ref[...].astype(jnp.float32)            # (Nb, C, HW_tile)
    acc_ref[...] += jnp.sum(x, axis=-1)           # (Nb, C)

    @pl.when(k == pl.num_programs(1) - 1)
    def _():
        avg = acc_ref[...] * inv_hw               # (Nb, C)  == AdaptiveAvgPool2d(1)
        h = jnp.dot(avg, w1t_ref[...],
                    preferred_element_type=jnp.float32)       # (Nb, Cr)  fc1
        h = jnp.maximum(h, 0.0)                                # ReLU
        out = jnp.dot(h, w2t_ref[...],
                      preferred_element_type=jnp.float32)      # (Nb, C)   fc2
        o_ref[...] = jax.nn.sigmoid(out).astype(o_ref.dtype)   # Sigmoid


def channel_attention(x_nchw, w1, w2, *, nb_max=8, block_bytes_budget=4 << 20):
    """x_nchw: (N, C, H, W); w1: (C//r, C); w2: (C, C//r).  Returns (N, C, 1, 1)."""
    N, C, H, W = x_nchw.shape
    Cr = w1.shape[0]
    HW = H * W
    x_flat = x_nchw.reshape(N, C, HW)
    w1t = jnp.transpose(w1)  # (C, Cr)
    w2t = jnp.transpose(w2)  # (Cr, C)

    # ---- Batch tile Nb: full N when small, else a multiple-of-8 divisor of N ----
    if N <= nb_max:
        nb = N
    else:
        nb = 0
        for cand in range(min(nb_max, N), 7, -1):
            if cand % 8 == 0 and N % cand == 0:
                nb = cand
                break
        if nb == 0:
            nb = N  # fall back: one batch block (full extent is always legal)

    # ---- HW tile: a multiple of 128 dividing HW, largest that fits the budget ----
    itemsize = jnp.dtype(x_flat.dtype).itemsize
    if HW % 128 == 0:
        tiles = [t for t in range(128, HW + 1, 128) if HW % t == 0]
        fitting = [t for t in tiles if nb * C * t * itemsize <= block_bytes_budget]
        hw_tile = max(fitting) if fitting else min(tiles)
    else:
        hw_tile = HW  # full extent (last dim must be a multiple of 128 or full)

    grid = (N // nb, HW // hw_tile)

    out = pl.pallas_call(
        functools.partial(channel_attention_kernel, inv_hw=1.0 / HW),
        out_shape=jax.ShapeDtypeStruct((N, C), jnp.float32),
        grid_spec=pltpu.PrefetchScalarGridSpec(
            num_scalar_prefetch=0,
            grid=grid,
            in_specs=[
                pl.BlockSpec((nb, C, hw_tile), lambda i, k: (i, 0, k)),
                pl.BlockSpec((C, Cr), lambda i, k: (0, 0)),
                pl.BlockSpec((Cr, C), lambda i, k: (0, 0)),
            ],
            out_specs=pl.BlockSpec((nb, C), lambda i, k: (i, 0)),
            scratch_shapes=[pltpu.VMEM((nb, C), jnp.float32)],
        ),
        compiler_params=pltpu.CompilerParams(
            dimension_semantics=("parallel", "arbitrary"),
            vmem_limit_bytes=32 << 20,  # above v5e's 16 MiB default, safe on v7x's 64 MiB physical
        ),
    )(x_flat, w1t, w2t)

    return out.reshape(N, C, 1, 1)


if __name__ == "__main__":
    # Small shapes consistent with the module (ratio=16 needs C >= 16).
    N, C, H, W = 2, 64, 16, 16
    ratio = 16
    Cr = C // ratio

    key = jax.random.PRNGKey(0)
    kx, k1, k2 = jax.random.split(key, 3)
    x = jax.random.normal(kx, (N, C, H, W), dtype=jnp.float32)
    # Deterministic synthetic weights (Conv2d(C, Cr, 1, bias=False) -> (Cr, C) after
    # dropping the 1x1 spatial dims; likewise fc2 -> (C, Cr)).
    w1 = jax.random.normal(k1, (Cr, C), dtype=jnp.float32) * (1.0 / jnp.sqrt(C))
    w2 = jax.random.normal(k2, (C, Cr), dtype=jnp.float32) * (1.0 / jnp.sqrt(Cr))

    out = channel_attention(x, w1, w2)
    out = jax.block_until_ready(out)

    # Pure-JAX reference check of the same forward pass.
    avg = jnp.mean(x, axis=(2, 3))                    # (N, C)
    h = jnp.maximum(avg @ w1.T, 0.0)                  # (N, Cr)
    ref = jax.nn.sigmoid(h @ w2.T).reshape(N, C, 1, 1)
    assert out.shape == (N, C, 1, 1)
    assert jnp.allclose(out, ref, atol=1e-5, rtol=1e-5)

    print("KERNEL_OK")
</pallas_src>

<mosaic_0001>
module attributes {stable_mosaic.version = 11 : i64} {
  func.func @channel_attention_kernel(%arg0: i32, %arg1: i32, %arg2: memref<2x64x256xf32, #tpu.memory_space<vmem>>, %arg3: memref<64x4xf32, #tpu.memory_space<vmem>>, %arg4: memref<4x64xf32, #tpu.memory_space<vmem>>, %arg5: memref<2x64xf32, #tpu.memory_space<vmem>>, %arg6: memref<2x64xf32, #tpu.memory_space<vmem>>) attributes {dimension_semantics = [#tpu.dimension_semantics<parallel>, #tpu.dimension_semantics<arbitrary>], iteration_bounds = array<i64: 1, 1>, scalar_prefetch = 0 : i64, scratch_operands = 1 : i64, tpu.core_type = #tpu.core_type<tc>, window_params = [{transform_indices = @transform_0, window_bounds = array<i64: 2, 64, 256>}, {pipeline_mode = #tpu.pipeline_mode<synchronous>, transform_indices = @transform_1, window_bounds = array<i64: 64, 4>}, {pipeline_mode = #tpu.pipeline_mode<synchronous>, transform_indices = @transform_2, window_bounds = array<i64: 4, 64>}, {transform_indices = @transform_3, window_bounds = array<i64: 2, 64>}]} {
    %c0_i32 = arith.constant 0 : i32
    %0 = arith.cmpi eq, %arg1, %c0_i32 : i32
    %1 = arith.extui %0 : i1 to i32
    %c0_i32_0 = arith.constant 0 : i32
    %2 = arith.cmpi ne, %1, %c0_i32_0 : i32
    scf.if %2 {
      %cst_9 = arith.constant 0.000000e+00 : f32
      %11 = vector.broadcast %cst_9 : f32 to vector<2x64xf32>
      %c0_10 = arith.constant 0 : index
      %c0_11 = arith.constant 0 : index
      %12 = vector.load %arg6[%c0_10, %c0_11] : memref<2x64xf32, #tpu.memory_space<vmem>>, vector<2x64xf32>
      tpu.vector_store %arg6[%c0_10, %c0_11], %11 {strides = array<i32>} : memref<2x64xf32, #tpu.memory_space<vmem>>, vector<2x64xf32>,
    } else {
    }
    %c0 = arith.constant 0 : index
    %c0_1 = arith.constant 0 : index
    %c0_2 = arith.constant 0 : index
    %3 = vector.load %arg2[%c0, %c0_1, %c0_2] : memref<2x64x256xf32, #tpu.memory_space<vmem>>, vector<2x64x256xf32>
    %c0_3 = arith.constant 0 : index
    %c0_4 = arith.constant 0 : index
    %4 = vector.load %arg6[%c0_3, %c0_4] : memref<2x64xf32, #tpu.memory_space<vmem>>, vector<2x64xf32>
    %cst = arith.constant dense<0.000000e+00> : vector<2x64xf32>
    %5 = vector.multi_reduction <add>, %3, %cst [2] : vector<2x64x256xf32> to vector<2x64xf32>
    %6 = arith.addf %4, %5 : vector<2x64xf32>
    %c0_5 = arith.constant 0 : index
    %c0_6 = arith.constant 0 : index
    %7 = vector.load %arg6[%c0_5, %c0_6] : memref<2x64xf32, #tpu.memory_space<vmem>>, vector<2x64xf32>
    tpu.vector_store %arg6[%c0_5, %c0_6], %6 {strides = array<i32>} : memref<2x64xf32, #tpu.memory_space<vmem>>, vector<2x64xf32>,
    %c0_i32_7 = arith.constant 0 : i32
    %8 = arith.cmpi eq, %arg1, %c0_i32_7 : i32
    %9 = arith.extui %8 : i1 to i32
    %c0_i32_8 = arith.constant 0 : i32
    %10 = arith.cmpi ne, %9, %c0_i32_8 : i32
    scf.if %10 {
      %c0_9 = arith.constant 0 : index
      %c0_10 = arith.constant 0 : index
      %11 = vector.load %arg6[%c0_9, %c0_10] : memref<2x64xf32, #tpu.memory_space<vmem>>, vector<2x64xf32>
      %cst_11 = arith.constant 3.906250e-03 : f32
      %12 = vector.broadcast %cst_11 : f32 to vector<2x64xf32>
      %13 = arith.mulf %11, %12 : vector<2x64xf32>
      %c0_12 = arith.constant 0 : index
      %c0_13 = arith.constant 0 : index
      %14 = vector.load %arg3[%c0_12, %c0_13] : memref<64x4xf32, #tpu.memory_space<vmem>>, vector<64x4xf32>
      %cst_14 = arith.constant dense<0.000000e+00> : vector<2x4xf32>
      %15 = tpu.matmul %13, %14, %cst_14 {dimension_numbers = #tpu.dot_dimension_numbers<[1], [0], [0], [1], [0, 0, 1, 1], [], []>} : vector<2x64xf32>, vector<64x4xf32>, vector<2x4xf32> -> vector<2x4xf32>
      %cst_15 = arith.constant 0.000000e+00 : f32
      %16 = vector.broadcast %cst_15 : f32 to vector<2x4xf32>
      %17 = arith.maximumf %15, %16 : vector<2x4xf32>
      %c0_16 = arith.constant 0 : index
      %c0_17 = arith.constant 0 : index
      %18 = vector.load %arg4[%c0_16, %c0_17] : memref<4x64xf32, #tpu.memory_space<vmem>>, vector<4x64xf32>
      %cst_18 = arith.constant dense<0.000000e+00> : vector<2x64xf32>
      %19 = tpu.matmul %17, %18, %cst_18 {dimension_numbers = #tpu.dot_dimension_numbers<[1], [0], [0], [1], [0, 0, 1, 1], [], []>} : vector<2x4xf32>, vector<4x64xf32>, vector<2x64xf32> -> vector<2x64xf32>
      %20 = arith.negf %19 : vector<2x64xf32>
      %21 = math.exp %20 : vector<2x64xf32>
      %cst_19 = arith.constant 1.000000e+00 : f32
      %22 = vector.broadcast %cst_19 : f32 to vector<2x64xf32>
      %23 = arith.addf %22, %21 : vector<2x64xf32>
      %24 = arith.divf %22, %23 : vector<2x64xf32>
      %c0_20 = arith.constant 0 : index
      %c0_21 = arith.constant 0 : index
      %25 = vector.load %arg5[%c0_20, %c0_21] : memref<2x64xf32, #tpu.memory_space<vmem>>, vector<2x64xf32>
      tpu.vector_store %arg5[%c0_20, %c0_21], %24 {strides = array<i32>} : memref<2x64xf32, #tpu.memory_space<vmem>>, vector<2x64xf32>,
    } else {
    }
    return
  }
  func.func @transform_0(%arg0: i32, %arg1: i32) -> (i32, i32, i32) {
    %c0_i32 = arith.constant 0 : i32
    %c0_i32_0 = arith.constant 0 : i32
    return %arg0, %c0_i32, %arg1 : i32, i32, i32
  }
  func.func @transform_1(%arg0: i32, %arg1: i32) -> (i32, i32) {
    %c0_i32 = arith.constant 0 : i32
    %c0_i32_0 = arith.constant 0 : i32
    %c0_i32_1 = arith.constant 0 : i32
    return %c0_i32, %c0_i32_0 : i32, i32
  }
  func.func @transform_2(%arg0: i32, %arg1: i32) -> (i32, i32) {
    %c0_i32 = arith.constant 0 : i32
    %c0_i32_0 = arith.constant 0 : i32
    %c0_i32_1 = arith.constant 0 : i32
    return %c0_i32, %c0_i32_0 : i32, i32
  }
  func.func @transform_3(%arg0: i32, %arg1: i32) -> (i32, i32) {
    %c0_i32 = arith.constant 0 : i32
    %c0_i32_0 = arith.constant 0 : i32
    return %arg0, %c0_i32 : i32, i32
  }
}

</mosaic_0001>

<bundles_post_ra>
// kernel: tpu_custom_call.1
= control target key start
LH: loop header
LB: loop body
LE: loop exit
PB: predicated region body
PF: predicated region fallthrough
CT: control target
= control target key end

     0   :  { %8 = vsyncpa [#allocation4], 0  ;;  %s586_s0 = inlined_call_operand.hbm [shape: f32[2,64,256], index: 0, kind: input, shape index: {}]   ;;  %s587_s1 = inlined_call_operand.vmem [shape: f32[64,4], index: 1, kind: input, shape index: {}]   ;;  %s588_s2 = inlined_call_operand.vmem [shape: f32[4,64], index: 2, kind: input, shape index: {}]   ;;  %s589_s3 = inlined_call_operand.hbm [shape: f32[2,64], index: 3, kind: output, shape index: {}]  }
   0x1   :  { %9 = vsyncpa [#allocation5], 0  ;;  %s514_s12 = smov [#allocation3]  }
   0x2   :  { %s15_s13 = sshll.u32 %s514_s12, 4  ;;  %s16_s13 = int_to_ptr.vmem [resolvable:$true] %s15_s13 }
   0x3   :  { %s478_s14 = scalar_lea.vmem %s16_s13, 4096  ;;  %p483_p1 = scmp.lt.s32.totalorder %s16_s13, %s16_s13 }
   0x4   :  { %p479_p0 = scmp.ne.s32.totalorder %s16_s13, %s478_s14  ;;  %p484_p2 = scmp.lt.s32.totalorder %s478_s14, %s478_s14 }
   0x6   :  { %p485_p3 = por %p484_p2, %p483_p1 }
   0x8   :  { %p486_p4 = pnand %p485_p3, %p479_p0 }
   0xa   :  { %489 = shalt.err (!%p486_p4)
}
   0xb   :  { %s515_s15 = smov 256   ;;  %s516_s16 = smov 16  }
   0xc   :  { %21 = dma.hbm_to_vmem [thread:$0]  %s586_s0, 4096, %s16_s13, [#allocation4], %s515_s15, %s515_s15, %s516_s16  }
   0xd   :  { %510 = dma.done.wait [#allocation4], 4096  }
   0xe   :  { %511 = vsyncadd [#allocation4], 4294963200  ;;  %v51_v0 = vld [vmem:[#allocation3 + $0x80] sm:$0xff]  ;;  %v52_v1 = vld [vmem:[#allocation3 + $0x88] sm:$0xff]  ;;  %vm33_vm0 = vcmask 517120   ;;  %v517_v48 = vmov 0.0   ;;  %v132_v61 = vlaneseq }
   0xf   :  { %v35_v2 = vld [vmem:[#allocation3] sm:$0xff]  ;;  %v92_v3 = vadd.f32 %v52_v1, %v51_v0  ;;  %v36_v4 = vld [vmem:[#allocation3 + $0x8] sm:$0xff]  ;;  %v53_v5 = vld [vmem:[#allocation3 + $0x90] sm:$0xff]  ;;  %34 = vst.msk [vmem:[#allocation2] sm:$0x3] %vm33_vm0, %v517_v48  ;;  %436 = vmatprep.subr.mxu0 %v517_v48  ;;  %455 = vmatprep.subr.mxu1 %v517_v48  ;;  %vm518_vm1 = vmmov 0  }
  0x10   :  { %v54_v6 = vld [vmem:[#allocation3 + $0x98] sm:$0xff]  ;;  %v68_v7 = vadd.f32 %v36_v4, %v35_v2  ;;  %v37_v8 = vld [vmem:[#allocation3 + $0x10] sm:$0xff]  ;;  %v55_v12 = vld [vmem:[#allocation3 + $0xa0] sm:$0xff]  ;;  %452 = vmatprep.mubr.msk.f32.mxu0 %vm518_vm1, %v517_v48  ;;  %457 = vmatprep.mubr.msk.f32.mxu1 %vm518_vm1, %v517_v48  ;;  %v133_v0 = vand.u32 127, %v132_v61  ;;  %vm143_vm2 = vcmask 130112   ;;  %vm150_vm3 = vcmask 195712  }
  0x11   :  { %v38_v9 = vld [vmem:[#allocation3 + $0x18] sm:$0xff]  ;;  %93 = vadd.xlane.f32.xlu1 %v92_v3  ;;  %v95_v10 = vadd.f32 %v54_v6, %v53_v5  ;;  %v56_v13 = vld [vmem:[#allocation3 + $0xa8] sm:$0xff]  ;;  %v39_v14 = vld [vmem:[#allocation3 + $0x20] sm:$0xff]  ;;  %v135_v5 = vshrl.u32 %v132_v61, 7  ;;  %vm157_vm4 = vcmask 261312   ;;  %vm164_vm5 = vcmask 326912  }
  0x12   :  { %69 = vadd.xlane.f32.xlu0 %v68_v7  ;;  %v71_v11 = vadd.f32 %v38_v9, %v37_v8  ;;  %v40_v15 = vld [vmem:[#allocation3 + $0x28] sm:$0xff]  ;;  %v98_v16 = vadd.f32 %v56_v13, %v55_v12  ;;  %v57_v18 = vld [vmem:[#allocation3 + $0xb0] sm:$0xff]  ;;  %v58_v19 = vld [vmem:[#allocation3 + $0xb8] sm:$0xff]  ;;  %v138_v2 = vadd.s32 4294967288, %v133_v0  ;;  %v145_v4 = vadd.s32 4294967280, %v133_v0  ;;  %s519_s8 = smov [#allocation6]  }
  0x13   :  { %v74_v17 = vadd.f32 %v40_v15, %v39_v14  ;;  %v41_v20 = vld [vmem:[#allocation3 + $0x30] sm:$0xff]  ;;  %v42_v21 = vld [vmem:[#allocation3 + $0x38] sm:$0xff]  ;;  %v101_v22 = vadd.f32 %v58_v19, %v57_v18  ;;  %v59_v24 = vld [vmem:[#allocation3 + $0xc0] sm:$0xff]  ;;  %v152_v6 = vadd.s32 4294967272, %v133_v0  ;;  %v159_v7 = vadd.s32 4294967264, %v133_v0  ;;  %s412_s9 = sshll.u32 %s519_s8, 4  ;;  %s413_s9 = int_to_ptr.vmem [resolvable:$true] %s412_s9 }
  0x14   :  { %v77_v23 = vadd.f32 %v42_v21, %v41_v20  ;;  %v60_v25 = vld [vmem:[#allocation3 + $0xc8] sm:$0xff]  ;;  %v43_v26 = vld [vmem:[#allocation3 + $0x40] sm:$0xff]  ;;  %v61_v30 = vld [vmem:[#allocation3 + $0xd0] sm:$0xff]  ;;  %v141_v9 = vsub.s32 %v138_v2, %v135_v5  ;;  %v148_v12 = vsub.s32 %v145_v4, %v135_v5  ;;  %v173_v13 = vadd.s32 4294967248, %v133_v0  ;;  %p495_p6 = scmp.lt.s32.totalorder %s413_s9, %s413_s9 }
  0x15   :  { %96 = vadd.xlane.f32.xlu1 %v95_v10  ;;  %v44_v27 = vld [vmem:[#allocation3 + $0x48] sm:$0xff]  ;;  %v104_v28 = vadd.f32 %v60_v25, %v59_v24  ;;  %v62_v31 = vld [vmem:[#allocation3 + $0xd8] sm:$0xff]  ;;  %v45_v32 = vld [vmem:[#allocation3 + $0x50] sm:$0xff]  ;;  %v136_v14 = vsub.s32 %v133_v0, %v135_v5  ;;  %v155_v15 = vsub.s32 %v152_v6, %v135_v5  ;;  %v180_v21 = vadd.s32 4294967240, %v133_v0 }
  0x16   :  { %72 = vadd.xlane.f32.xlu0 %v71_v11  ;;  %v80_v29 = vadd.f32 %v44_v27, %v43_v26  ;;  %v46_v33 = vld [vmem:[#allocation3 + $0x58] sm:$0xff]  ;;  %v107_v34 = vadd.f32 %v62_v31, %v61_v30  ;;  %v63_v36 = vld [vmem:[#allocation3 + $0xe0] sm:$0xff]  ;;  %v64_v37 = vld [vmem:[#allocation3 + $0xe8] sm:$0xff]  ;;  %v166_v11 = vadd.s32 4294967256, %v133_v0  ;;  %v176_v24 = vsub.s32 %v173_v13, %v135_v5 }
  0x17   :  { %v83_v35 = vadd.f32 %v46_v33, %v45_v32  ;;  %v47_v38 = vld [vmem:[#allocation3 + $0x60] sm:$0xff]  ;;  %v48_v39 = vld [vmem:[#allocation3 + $0x68] sm:$0xff]  ;;  %v110_v40 = vadd.f32 %v64_v37, %v63_v36  ;;  %v65_v42 = vld [vmem:[#allocation3 + $0xf0] sm:$0xff]  ;;  %vm171_vm6 = vcmask 392512   ;;  %v183_v36 = vsub.s32 %v180_v21, %v135_v5 }
  0x18   :  { %v86_v41 = vadd.f32 %v48_v39, %v47_v38  ;;  %v66_v43 = vld [vmem:[#allocation3 + $0xf8] sm:$0xff]  ;;  %v49_v44 = vld [vmem:[#allocation3 + $0x70] sm:$0xff]  ;;  %v242_v51 = vld [vmem:[%s587_s1 + $0x28] sm:$0xff]  ;;  %v169_v19 = vsub.s32 %v166_v11, %v135_v5  ;;  %vm178_vm7 = vcmask 458112   ;;  %vm185_vm8 = vcmask 523712  }
  0x19   :  { %99 = vadd.xlane.f32.xlu1 %v98_v16  ;;  %v50_v45 = vld [vmem:[#allocation3 + $0x78] sm:$0xff]  ;;  %v113_v46 = vadd.f32 %v66_v43, %v65_v42  ;;  %v243_v50 = vld [vmem:[%s587_s1 + $0x30] sm:$0xff]  ;;  %v238_v55 = vld [vmem:[%s587_s1 + $0x8] sm:$0xff]  ;;  %v162_v16 = vsub.s32 %v159_v7, %v135_v5  ;;  %vm226_vm9 = vcmask 1041409   ;;  %vm245_vm10 = vcmask 523264  }
  0x1a   :  { %75 = vadd.xlane.f32.xlu0 %v74_v17  ;;  %v89_v47 = vadd.f32 %v50_v45, %v49_v44  ;;  %v244_v49 = vld [vmem:[%s587_s1 + $0x38] sm:$0xff]  ;;  %v241_v52 = vld [vmem:[%s587_s1 + $0x20] sm:$0xff]  ;;  %v239_v54 = vld [vmem:[%s587_s1 + $0x10] sm:$0xff]  ;;  %vm325_vm11 = vcmask 1043456   ;;  %vm321_vm12 = vcmask 31744  }
  0x1b   :  { %437 = vmatpush3.msra.mxu0 %v244_v49  ;;  %v240_v53 = vld [vmem:[%s587_s1 + $0x18] sm:$0xff]  ;;  %v237_v56 = vld [vmem:[%s587_s1] sm:$0xff] }
  0x1c   :  { %438 = vmatprep.subr.mxu0 %v517_v48 }
  0x1d   :  { %102 = vadd.xlane.f32.xlu1 %v101_v22  ;;  %439 = vmatpush3.msra.mxu0 %v243_v50 }
  0x1e   :  { %78 = vadd.xlane.f32.xlu0 %v77_v23  ;;  %440 = vmatprep.subr.mxu0 %v517_v48 }
  0x1f   :  { %441 = vmatpush3.msra.mxu0 %v242_v51 }
  0x20   :  { %442 = vmatprep.subr.mxu0 %v517_v48 }
  0x21   :  { %105 = vadd.xlane.f32.xlu1 %v104_v28  ;;  %443 = vmatpush3.msra.mxu0 %v241_v52 }
  0x22   :  { %81 = vadd.xlane.f32.xlu0 %v80_v29  ;;  %444 = vmatprep.subr.mxu0 %v517_v48 }
  0x23   :  { %445 = vmatpush3.msra.mxu0 %v240_v53 }
  0x24   :  { %446 = vmatprep.subr.mxu0 %v517_v48 }
  0x25   :  { %108 = vadd.xlane.f32.xlu1 %v107_v34  ;;  %447 = vmatpush3.msra.mxu0 %v239_v54 }
  0x26   :  { %84 = vadd.xlane.f32.xlu0 %v83_v35  ;;  %448 = vmatprep.subr.mxu0 %v517_v48 }
  0x27   :  { %449 = vmatpush3.msra.mxu0 %v238_v55 }
  0x28   :  { %450 = vmatprep.subr.mxu0 %v517_v48 }
  0x29   :  { %111 = vadd.xlane.f32.xlu1 %v110_v40  ;;  %451 = vmatpush3.msra.mxu0 %v237_v56  ;;  %v67_v56 = vld [vmem:[#allocation2] sm:$0x3] }
  0x2a   :  { %87 = vadd.xlane.f32.xlu0 %v86_v41 }
  0x2d   :  { %114 = vadd.xlane.f32.xlu1 %v113_v46 }
  0x2e   :  { %90 = vadd.xlane.f32.xlu0 %v89_v47 }
  0x9a   :  { %v94_v57 = vpop.xlane.xlu1 %93 }
  0x9b   :  { %v70_v58 = vpop.xlane.xlu0 %69  ;;  %v190_v25 = vrot.slane %v94_v57, %v136_v14 }
  0x9c   :  { %v137_v28 = vrot.slane %v70_v58, %v136_v14 }
  0x9e   :  { %v97_v59 = vpop.xlane.xlu1 %96 }
  0x9f   :  { %v73_v60 = vpop.xlane.xlu0 %72  ;;  %v194_v18 = vrot.slane %v97_v59, %v141_v9 }
  0xa0   :  { %v142_v22 = vrot.slane %v73_v60, %v141_v9 }
  0xa1   :  { %v195_v32 = vsel %vm143_vm2, %v194_v18, %v190_v25 }
  0xa2   :  { %v100_v62 = vpop.xlane.xlu1 %99  ;;  %v144_v37 = vsel %vm143_vm2, %v142_v22, %v137_v28 }
  0xa3   :  { %v76_v63 = vpop.xlane.xlu0 %75  ;;  %v199_v23 = vrot.slane %v100_v62, %v148_v12  ;;  %v320_v62 = vld [vmem:[%s588_s2] sm:$0xf]  ;;  %s490_s2 = scalar_lea.vmem %s413_s9, 32 }
  0xa4   :  { %v149_v26 = vrot.slane %v76_v63, %v148_v12  ;;  %456 = vmatpush3.msk.msra.mxu1 %vm325_vm11, %v320_v62  ;;  %p491_p5 = scmp.ne.s32.totalorder %s413_s9, %s490_s2  ;;  %p496_p7 = scmp.lt.s32.totalorder %s490_s2, %s490_s2 }
  0xa5   :  { %v200_v38 = vsel %vm150_vm3, %v199_v23, %v195_v32 }
  0xa6   :  { %v103_v1 = vpop.xlane.xlu1 %102  ;;  %v151_v41 = vsel %vm150_vm3, %v149_v26, %v144_v37  ;;  %p497_p8 = por %p496_p7, %p495_p6 }
  0xa7   :  { %v79_v3 = vpop.xlane.xlu0 %78  ;;  %v204_v27 = vrot.slane %v103_v1, %v155_v15 }
  0xa8   :  { %v156_v29 = vrot.slane %v79_v3, %v155_v15  ;;  %p498_p9 = pnand %p497_p8, %p491_p5 }
  0xa9   :  { %v205_v42 = vsel %vm157_vm4, %v204_v27, %v200_v38 }
  0xaa   :  { %v106_v8 = vpop.xlane.xlu1 %105  ;;  %v158_v44 = vsel %vm157_vm4, %v156_v29, %v151_v41 }
  0xab   :  { %v82_v10 = vpop.xlane.xlu0 %81  ;;  %v209_v30 = vrot.slane %v106_v8, %v162_v16 }
  0xac   :  { %v163_v33 = vrot.slane %v82_v10, %v162_v16 }
  0xad   :  { %v210_v45 = vsel %vm164_vm5, %v209_v30, %v205_v42 }
  0xae   :  { %v109_v17 = vpop.xlane.xlu1 %108  ;;  %v165_v47 = vsel %vm164_vm5, %v163_v33, %v158_v44 }
  0xaf   :  { %v85_v20 = vpop.xlane.xlu0 %84  ;;  %v214_v34 = vrot.slane %v109_v17, %v169_v19 }
  0xb0   :  { %v170_v39 = vrot.slane %v85_v20, %v169_v19 }
  0xb1   :  { %v215_v48 = vsel %vm171_vm6, %v214_v34, %v210_v45 }
  0xb2   :  { %v112_v31 = vpop.xlane.xlu1 %111  ;;  %v172_v51 = vsel %vm171_vm6, %v170_v39, %v165_v47 }
  0xb3   :  { %v88_v35 = vpop.xlane.xlu0 %87  ;;  %v219_v40 = vrot.slane %v112_v31, %v176_v24 }
  0xb4   :  { %v177_v43 = vrot.slane %v88_v35, %v176_v24 }
  0xb5   :  { %v220_v52 = vsel %vm178_vm7, %v219_v40, %v215_v48 }
  0xb6   :  { %v115_v46 = vpop.xlane.xlu1 %114  ;;  %v179_v54 = vsel %vm178_vm7, %v177_v43, %v172_v51 }
  0xb7   :  { %v224_v49 = vrot.slane %v115_v46, %v183_v36  ;;  %v91_v50 = vpop.xlane.xlu0 %90 }
  0xb8   :  { %v184_v53 = vrot.slane %v91_v50, %v183_v36 }
  0xb9   :  { %v225_v55 = vsel %vm185_vm8, %v224_v49, %v220_v52 }
  0xba   :  { %v186_v57 = vsel %vm185_vm8, %v184_v53, %v179_v54 }
  0xbb   :  { %v227_v58 = vsel %vm226_vm9, %v225_v55, %v186_v57 }
  0xbc   :  { %v229_v59 = vadd.f32 %v227_v58, %v67_v56 }
  0xbe   :  { %231 = vst.msk [vmem:[#allocation2] sm:$0x3] %vm33_vm0, %v229_v59 }
  0xc5   :  { %v235_v60 = vld [vmem:[#allocation2] sm:$0x3] }
  0xc6   :  { %v236_v61 = vmul.f32 0.00390625, %v235_v60 }
  0xc8   :  { %453 = vmatmul.mubr.msk.f32.vlgmr.msra.gmra.mxu0 %vm245_vm10, %v236_v61 }
 0x188   :  { %v315_v63 = vpop.f32.mrf.mxu0 }
 0x189   :  { %v319_v0 = vmax.f32 %v315_v63, 0.0 }
 0x18a   :  { %v454_v1 = vpop.f32.mrf.mxu0 }
 0x18b   :  { %458 = vmatmul.mubr.msk.f32.vlgmr.msra.gmra.mxu1 %vm321_vm12, %v319_v0 }
 0x24b   :  { %v395_v2 = vpop.f32.mrf.mxu1 }
 0x24c   :  { %v424_v3 = vmul.f32 -1.442695, %v395_v2 }
 0x24d   :  { %v459_v4 = vpop.f32.mrf.mxu1 }
 0x24e   :  { %466 = vpow2.f32 %v424_v3 }
 0x25b   :  { %v467_v5 = vpop.eup %466 }
 0x25c   :  { %v402_v6 = vadd.f32 1.0, %v467_v5 }
 0x25e   :  { %468 = vrcp.f32 %v402_v6 }
 0x26b   :  { %v469_v7 = vpop.eup %468 }
 0x26c   :  { %405 = vst.msk [vmem:[#allocation6] sm:$0x3] %vm33_vm0, %v469_v7 }
 0x26d   :  { %501 = shalt.err (!%p498_p9)
}
 0x26e   :  { %415 = dma.vmem_to_hbm [thread:$0]  %s413_s9, 32, %s589_s3, [#allocation5]  }
 0x26f   :  { %512 = dma.done.wait [#allocation5], 32  }
 0x270   :  { %513 = vsyncadd [#allocation5], 4294967264 }
 0x271   :  { %419 = vsyncpa [#allocation4], 1 }
 0x272   :  { %420 = vsyncpa [#allocation5], 1 }

</bundles_post_ra>
